<compile_context>
chip_gen: v6e
topology: v6e:2x2x1
jax: 0.10.0
libtpu: 0.0.40
codegen_flags: <defaults>
</compile_context>

<pallas_src>
import functools

import jax
import jax.numpy as jnp
from jax.experimental import pallas as pl
from jax.experimental.pallas import tpu as pltpu


def _layernorm_kernel(x_ref, g_ref, b_ref, o_ref, *, eps, feat):
    # x_ref: (tm, D)   g_ref: (1, D)   b_ref: (1, D)   o_ref: (tm, D)
    x = x_ref[...].astype(jnp.float32)

    # Single pass over the tile for the statistics.
    s = jnp.sum(x, axis=-1, keepdims=True)
    sq = jnp.sum(x * x, axis=-1, keepdims=True)
    mean = s * (1.0 / feat)
    # PyTorch x.std(-1): Bessel-corrected.  var = (sum(x^2) - D*mean^2) / (D-1)
    var = (sq - feat * mean * mean) * (1.0 / max(feat - 1.0, 1.0))
    var = jnp.maximum(var, 0.0)          # guard tiny negative from cancellation
    std = jnp.sqrt(var)
    inv = 1.0 / (std + eps)              # eps added to std (matches the module)

    g = g_ref[...].astype(jnp.float32)
    b = b_ref[...].astype(jnp.float32)
    o_ref[...] = (g * ((x - mean) * inv) + b).astype(o_ref.dtype)


def _pick_row_tile(n_rows, d, itemsize):
    """Row tile: ~4 MiB block (<= 8 MiB), dtype-sublane aligned, >= 2 grid steps."""
    sub = max(8, 32 // itemsize)             # 8 f32, 16 bf16, 32 int8/fp8
    row_bytes = d * itemsize
    target_rows = (4 << 20) // row_bytes     # ~4 MiB block -> ~16 MiB pipelined VMEM
    cap_rows = (8 << 20) // row_bytes        # never exceed ~8 MiB / block (v7x budget)
    tm = max(sub, (min(target_rows, cap_rows) // sub) * sub)
    # Ensure the row grid has >= 2 steps so the "parallel" axis spans both
    # TensorCores on v7x (no effect on v5e/v6e correctness or perf).
    half = pl.cdiv(n_rows, 2)
    tm = min(tm, max(sub, pl.cdiv(half, sub) * sub))
    return tm


def layernorm_forward(x, gamma, beta, *, eps=1e-6):
    """
    x:     (..., D)  any leading dims, features last
    gamma: (D,)      scale  (a_2)
    beta:  (D,)      shift  (b_2)
    returns tensor of x.shape / x.dtype, LayerNorm'd over the last axis with
    PyTorch semantics (unbiased std, eps added to std).
    """
    orig_shape = x.shape
    D = orig_shape[-1]
    N = 1
    for s in orig_shape[:-1]:
        N *= s

    x2d = x.reshape(N, D)
    itemsize = x2d.dtype.itemsize
    tm = _pick_row_tile(N, D, itemsize)
    grid = (pl.cdiv(N, tm),)   # partial tail block handled by Pallas masking

    g2d = gamma.reshape(1, D)
    b2d = beta.reshape(1, D)

    # VMEM budget: 2x double-buffered input + 2x output blocks + gamma/beta + slack.
    block_bytes = tm * D * itemsize
    vmem_needed = 4 * block_bytes + 4 * D * g2d.dtype.itemsize + (2 << 20)
    vmem_limit = int(min(max(vmem_needed, 32 << 20), 48 << 20))

    # TODO(synk): extremely large D (feature tile alone > ~8 MiB) would need a
    # feature-axis split with an online reduction; not required for typical hidden sizes.
    # Note: if D is not a multiple of 128 the output stores are lane-masked
    # (vst.msk); real transformer hidden sizes are 128-aligned so no feature
    # padding is done here.

    kernel = functools.partial(_layernorm_kernel, eps=float(eps), feat=float(D))

    out2d = pl.pallas_call(
        kernel,
        out_shape=jax.ShapeDtypeStruct((N, D), x.dtype),
        grid_spec=pltpu.PrefetchScalarGridSpec(
            num_scalar_prefetch=0,
            grid=grid,
            in_specs=[
                pl.BlockSpec((tm, D), lambda i: (i, 0)),   # token rows
                pl.BlockSpec((1, D), lambda i: (0, 0)),    # gamma (resident)
                pl.BlockSpec((1, D), lambda i: (0, 0)),    # beta  (resident)
            ],
            out_specs=pl.BlockSpec((tm, D), lambda i: (i, 0)),
        ),
        compiler_params=pltpu.CompilerParams(
            dimension_semantics=("parallel",),   # shards rows across TCs on v7x
            vmem_limit_bytes=vmem_limit,         # v5e scoped default is only 16 MiB
        ),
    )(x2d, g2d, b2d)

    return out2d.reshape(orig_shape)


def _layernorm_ref(x, gamma, beta, eps=1e-6):
    # Pure-JAX reference with PyTorch semantics (unbiased std, eps on std).
    x32 = x.astype(jnp.float32)
    mean = jnp.mean(x32, axis=-1, keepdims=True)
    diff = x32 - mean
    var = jnp.sum(diff * diff, axis=-1, keepdims=True) / max(x.shape[-1] - 1, 1)
    std = jnp.sqrt(var)
    return (gamma.astype(jnp.float32) * diff / (std + eps)
            + beta.astype(jnp.float32)).astype(x.dtype)


if __name__ == "__main__":
    key = jax.random.PRNGKey(0)
    kx, kg, kb, kx2, kx3 = jax.random.split(key, 5)

    # Small shapes consistent with the module's forward: (batch, seq, hidden).
    B, S, D = 2, 8, 32
    eps = 1e-6

    x = jax.random.normal(kx, (B, S, D), dtype=jnp.float32)
    a_2 = 1.0 + 0.05 * jax.random.normal(kg, (D,), dtype=jnp.float32)   # ~torch.ones init
    b_2 = 0.05 * jax.random.normal(kb, (D,), dtype=jnp.float32)         # ~torch.zeros init

    out = jax.block_until_ready(layernorm_forward(x, a_2, b_2, eps=eps))
    ref = _layernorm_ref(x, a_2, b_2, eps=eps)
    assert out.shape == (B, S, D)
    assert jnp.allclose(out, ref, atol=1e-5, rtol=1e-5)

    # Ragged token count (N=18 with tm=16): exercises the masked partial tail block.
    x2 = jax.random.normal(kx2, (2, 9, D), dtype=jnp.float32)
    out2 = jax.block_until_ready(layernorm_forward(x2, a_2, b_2, eps=eps))
    ref2 = _layernorm_ref(x2, a_2, b_2, eps=eps)
    assert jnp.allclose(out2, ref2, atol=1e-5, rtol=1e-5)

    # bf16 input: exercises the 16-row sublane-packing tile rounding.
    x3 = jax.random.normal(kx3, (B, S, D), dtype=jnp.bfloat16)
    out3 = jax.block_until_ready(layernorm_forward(x3, a_2, b_2, eps=eps))
    ref3 = _layernorm_ref(x3, a_2, b_2, eps=eps)
    assert out3.dtype == jnp.bfloat16
    assert jnp.allclose(out3.astype(jnp.float32), ref3.astype(jnp.float32),
                        atol=5e-2, rtol=5e-2)

    print("KERNEL_OK")
</pallas_src>

<mosaic_0001>
module attributes {stable_mosaic.version = 11 : i64} {
  func.func @_layernorm_kernel(%arg0: i32, %arg1: memref<8x32xf32, #tpu.memory_space<vmem>>, %arg2: memref<1x32xf32, #tpu.memory_space<vmem>>, %arg3: memref<1x32xf32, #tpu.memory_space<vmem>>, %arg4: memref<8x32xf32, #tpu.memory_space<vmem>>) attributes {dimension_semantics = [#tpu.dimension_semantics<parallel>], iteration_bounds = array<i64: 2>, scalar_prefetch = 0 : i64, scratch_operands = 0 : i64, tpu.core_type = #tpu.core_type<tc>, window_params = [{transform_indices = @transform_0, window_bounds = array<i64: 8, 32>}, {pipeline_mode = #tpu.pipeline_mode<synchronous>, transform_indices = @transform_1, window_bounds = array<i64: 1, 32>}, {pipeline_mode = #tpu.pipeline_mode<synchronous>, transform_indices = @transform_2, window_bounds = array<i64: 1, 32>}, {transform_indices = @transform_3, window_bounds = array<i64: 8, 32>}]} {
    %c0 = arith.constant 0 : index
    %c0_0 = arith.constant 0 : index
    %0 = vector.load %arg1[%c0, %c0_0] : memref<8x32xf32, #tpu.memory_space<vmem>>, vector<8x32xf32>
    %cst = arith.constant dense<0.000000e+00> : vector<8xf32>
    %1 = vector.multi_reduction <add>, %0, %cst [1] : vector<8x32xf32> to vector<8xf32>
    %2 = vector.shape_cast %1 : vector<8xf32> to vector<8x1xf32>
    %3 = arith.mulf %0, %0 : vector<8x32xf32>
    %cst_1 = arith.constant dense<0.000000e+00> : vector<8xf32>
    %4 = vector.multi_reduction <add>, %3, %cst_1 [1] : vector<8x32xf32> to vector<8xf32>
    %5 = vector.shape_cast %4 : vector<8xf32> to vector<8x1xf32>
    %cst_2 = arith.constant 3.125000e-02 : f32
    %6 = vector.broadcast %cst_2 : f32 to vector<8x1xf32>
    %7 = arith.mulf %2, %6 : vector<8x1xf32>
    %cst_3 = arith.constant 3.200000e+01 : f32
    %8 = vector.broadcast %cst_3 : f32 to vector<8x1xf32>
    %9 = arith.mulf %8, %7 : vector<8x1xf32>
    %10 = arith.mulf %9, %7 : vector<8x1xf32>
    %11 = arith.subf %5, %10 : vector<8x1xf32>
    %cst_4 = arith.constant 0.0322580636 : f32
    %12 = vector.broadcast %cst_4 : f32 to vector<8x1xf32>
    %13 = arith.mulf %11, %12 : vector<8x1xf32>
    %cst_5 = arith.constant 0.000000e+00 : f32
    %14 = vector.broadcast %cst_5 : f32 to vector<8x1xf32>
    %15 = arith.maximumf %13, %14 : vector<8x1xf32>
    %16 = math.sqrt %15 : vector<8x1xf32>
    %cst_6 = arith.constant 9.99999997E-7 : f32
    %17 = vector.broadcast %cst_6 : f32 to vector<8x1xf32>
    %18 = arith.addf %16, %17 : vector<8x1xf32>
    %cst_7 = arith.constant 1.000000e+00 : f32
    %19 = vector.broadcast %cst_7 : f32 to vector<8x1xf32>
    %20 = arith.divf %19, %18 : vector<8x1xf32>
    %c0_8 = arith.constant 0 : index
    %c0_9 = arith.constant 0 : index
    %21 = vector.load %arg2[%c0_8, %c0_9] : memref<1x32xf32, #tpu.memory_space<vmem>>, vector<1x32xf32>
    %c0_10 = arith.constant 0 : index
    %c0_11 = arith.constant 0 : index
    %22 = vector.load %arg3[%c0_10, %c0_11] : memref<1x32xf32, #tpu.memory_space<vmem>>, vector<1x32xf32>
    %23 = vector.broadcast %7 : vector<8x1xf32> to vector<8x32xf32>
    %24 = arith.subf %0, %23 : vector<8x32xf32>
    %25 = vector.broadcast %20 : vector<8x1xf32> to vector<8x32xf32>
    %26 = arith.mulf %24, %25 : vector<8x32xf32>
    %27 = vector.broadcast %21 : vector<1x32xf32> to vector<8x32xf32>
    %28 = arith.mulf %27, %26 : vector<8x32xf32>
    %29 = vector.broadcast %22 : vector<1x32xf32> to vector<8x32xf32>
    %30 = arith.addf %28, %29 : vector<8x32xf32>
    %c0_12 = arith.constant 0 : index
    %c0_13 = arith.constant 0 : index
    %31 = vector.load %arg4[%c0_12, %c0_13] : memref<8x32xf32, #tpu.memory_space<vmem>>, vector<8x32xf32>
    tpu.vector_store %arg4[%c0_12, %c0_13], %30 {strides = array<i32>} : memref<8x32xf32, #tpu.memory_space<vmem>>, vector<8x32xf32>,
    return
  }
  func.func @transform_0(%arg0: i32) -> (i32, i32) {
    %c0_i32 = arith.constant 0 : i32
    %c0_i32_0 = arith.constant 0 : i32
    return %arg0, %c0_i32 : i32, i32
  }
  func.func @transform_1(%arg0: i32) -> (i32, i32) {
    %c0_i32 = arith.constant 0 : i32
    %c0_i32_0 = arith.constant 0 : i32
    %c0_i32_1 = arith.constant 0 : i32
    return %c0_i32, %c0_i32_0 : i32, i32
  }
  func.func @transform_2(%arg0: i32) -> (i32, i32) {
    %c0_i32 = arith.constant 0 : i32
    %c0_i32_0 = arith.constant 0 : i32
    %c0_i32_1 = arith.constant 0 : i32
    return %c0_i32, %c0_i32_0 : i32, i32
  }
  func.func @transform_3(%arg0: i32) -> (i32, i32) {
    %c0_i32 = arith.constant 0 : i32
    %c0_i32_0 = arith.constant 0 : i32
    return %arg0, %c0_i32 : i32, i32
  }
}

</mosaic_0001>

<bundles_post_ra>
// kernel: tpu_custom_call.1
= control target key start
LH: loop header
LB: loop body
LE: loop exit
PB: predicated region body
PF: predicated region fallthrough
CT: control target
= control target key end

     0   :  { %8 = vsyncpa [#allocation3], 0  ;;  %s648_s0 = inlined_call_operand.hbm [shape: f32[16,32], index: 0, kind: input, shape index: {}]   ;;  %s649_s1 = inlined_call_operand.vmem [shape: f32[1,32], index: 1, kind: input, shape index: {}]   ;;  %s650_s2 = inlined_call_operand.vmem [shape: f32[1,32], index: 2, kind: input, shape index: {}]   ;;  %s651_s3 = inlined_call_operand.hbm [shape: f32[16,32], index: 3, kind: output, shape index: {}]  }
   0x1   :  { %10 = vsyncpa [#allocation3 + $0x1], 0 }
   0x2   :  { %11 = vsyncpa [#allocation4], 0 }
   0x3   :  { %13 = vsyncpa [#allocation4 + $0x1], 0  ;;  %s494_s12 = smov 0   ;;  %s496_s13 = smov 0  }
   0x4   :  { %s498_s14 = smov 0   ;;  %s500_s15 = smov 0  }
   0x5 LB: > { %s515_s16 = sadd.s32 4294967295, %s470_s15   ;;  %s314_s17 = sadd.s32 4294967294, %s470_s15   ;;  %s470_s15 = sphi %s500_s15, %s668_s15   ;;  %s466_s14 = sphi %s498_s14, %s667_s14   ;;  %s462_s13 = sphi %s496_s13, %s666_s13   ;;  %s458_s12 = sphi %s494_s12, %s665_s12  }
   0x6   : > { %s519_s18 = sadd.s32 1, %s470_s15   ;;  %s26_s19 = sadd.s32 1, %s466_s14 }
   0x7   : > { %s23_s20 = ssub.s32 %s470_s15, %s519_s18  ;;  %p33_p0 = scmp.ne.s32.totalorder %s466_s14, %s462_s13 }
   0x8   : > { %p24_p1 = scmp.eq.s32.totalorder %s23_s20, 0  ;;  %p34_p2 = scmp.eq.s32.totalorder %s470_s15, 0 }
   0x9   : > { %p39_p3 = scmp.ne.s32.totalorder %s462_s13, %s458_s12  ;;  %p40_p4 = scmp.eq.s32.totalorder %s515_s16, 0 }
   0xa   : > { %s531_s21 = scalar_select %p24_p1, %s466_s14, %s26_s19  }
   0xb   : > { %p533_p5 = por %p34_p2, %p33_p0  ;;  %p537_p6 = por %p40_p4, %p39_p3 }
   0xc   : > { %p105_p7 = scmp.eq.s32.totalorder %s515_s16, 1  ;;  %p111_p8 = scmp.eq.s32.totalorder %s314_s17, 1 }
   0xd   : > { %s655_s23 = scalar_select %p537_p6, 1, 0 }
   0xe   : > { %p340_p10 = scmp.lt.s32.totalorder %s470_s15, 2  ;;  %p544_p11 = por %p105_p7, %p33_p0 }
   0xf   : > { %p548_p12 = por %p111_p8, %p39_p3  ;;  %s137_s26 = sand.u32 1, %s466_s14  }
  0x10   : > { %s656_s24 = scalar_select %p544_p11, 1, 0 }
  0x11   : > { %s657_s25 = scalar_select %p548_p12, 1, 0 }
  0x12   : > { %s318_s27 = sshll.u32 %s470_s15, 7  ;;  %s317_s28 = sshll.u32 %s137_s26, 3 }
  0x13   : > { %s557_s4 = scalar_lea.hbm %s648_s0, %s318_s27  ;;  %s141_s5 = scalar_lea.vmem [#allocation2], %s317_s28 }
  0x14   : > { %s148_s6 = sshll.u32 %s141_s5, 4  ;;  %p561_p13 = pnand %p340_p10, %p533_p5  ;;  %s565_s6 = int_to_ptr.vmem [resolvable:$true] %s148_s6 }
  0x15   : > { %s138_s8 = scalar_lea.sflag [#allocation3], %s137_s26  ;;  %s378_s9 = scalar_lea.hbm %s557_s4, 128 }
  0x16   : > { %p379_p2 = scmp.ne.s32.totalorder %s557_s4, %s378_s9  ;;  %p380_p3 = pneg %p561_p13 }
  0x17   : > { %s383_s17 = scalar_lea.hbm %s648_s0, 256  ;;  %p384_p5 = scmp.lt.s32.totalorder %s557_s4, %s648_s0 }
  0x18   : > { %p381_p4 = pnand %p380_p3, %p379_p2  ;;  %p385_p8 = scmp.lt.s32.totalorder %s383_s17, %s378_s9 }
  0x1a   : > { %p382_p7 = pneg %p381_p4  ;;  %p386_p10 = por %p385_p8, %p384_p5 }
  0x1c   : > { %p387_p9 = pnand %p386_p10, %p382_p7 }
  0x1e   : > { %390 = shalt.err (!%p387_p9)
}
  0x1f   : > { %s391_s22 = scalar_lea.vmem %s565_s6, 128  ;;  %s472_s26 = smov [#allocation2]  }
  0x20   : > { %p392_p0 = scmp.ne.s32.totalorder %s565_s6, %s391_s22  ;;  %s396_s27 = sshll.u32 %s472_s26, 4  ;;  %s397_s27 = int_to_ptr.vmem [resolvable:$false] %s396_s27 }
  0x21   : > { %s398_s28 = scalar_lea.vmem %s397_s27, 256  ;;  %p399_p4 = scmp.lt.s32.totalorder %s565_s6, %s397_s27 }
  0x22   : > { %p394_p1 = pnand %p392_p0, %p380_p3  ;;  %p400_p12 = scmp.lt.s32.totalorder %s398_s28, %s391_s22 }
  0x24   : > { %p395_p2 = pneg %p394_p1  ;;  %p401_p11 = por %p400_p12, %p399_p4 }
  0x26   : > { %p402_p6 = pnand %p401_p11, %p395_p2 }
  0x28   : > { %405 = shalt.err (!%p402_p6)
}
  0x29   : > { %335 = dma.hbm_to_vmem [thread:$0]  (!%p561_p13), %s557_s4, 128, %s565_s6, %s138_s8  }
  0x2a   : > { %p659_p9 = scmp.lt.s32.totalorder %s470_s15, 3  ;;  %p660_p7 = scmp.ge.s32.totalorder %s470_s15, 1 }
  0x2c   : > { %p154_p0 = pnand %p660_p7, %p659_p9 }
  0x2d   : > { %s592_s29 = sand.u32 (!%p154_p0), 1, %s462_s13   ;;  %p661_p6 = scmp.ne.s32.totalorder (!%p154_p0), %s655_s23, 0 }
  0x2e   : > { %157 = sbr.rel (%p154_p0) target bundleno = 257 (0x101), region = 32  ;;  %s320_s30 = sshll.u32 (!%p154_p0), %s592_s29, 3 }
  0x2f   : > { %s160_s5 = scalar_lea.sflag (!%p154_p0), [#allocation3], %s592_s29  ;;  %s163_s7 = scalar_lea.vmem (!%p154_p0), [#allocation2], %s320_s30 }
  0x33   : > { %449 = dma.done.wait (%p661_p6), %s160_s5, 128  }
  0x34   : > { %451 = vsyncadd (%p661_p6), %s160_s5, 4294967168  ;;  %vm187_vm0 = vcmask 261120   ;;  %v186_v0 = vld [vmem:[%s163_s7] sm:$0xff]  ;;  %s325_s9 = sshll.u32 %s515_s16, 7  ;;  %s185_s10 = scalar_lea.vmem [#allocation5], %s320_s30 }
  0x35   : > { %v188_v1 = vsel %vm187_vm0, %v186_v0, 0.0  ;;  %v191_v2 = vmul.f32 %v186_v0, %v186_v0  ;;  %v322_v20 = vld [vmem:[%s649_s1] ss:$0 sm:$0xff]  ;;  %s244_s11 = sshll.u32 %s185_s10, 4  ;;  %s242_s20 = scalar_lea.hbm %s651_s3, %s325_s9  ;;  %s245_s11 = int_to_ptr.vmem [resolvable:$true] %s244_s11 }
  0x36   : > { %189 = vadd.xlane.f32.xlu0 %v188_v1  ;;  %v323_v22 = vld [vmem:[%s650_s2] ss:$0 sm:$0xff]  ;;  %s231_s22 = scalar_lea.sflag [#allocation4], %s592_s29  ;;  %s406_s26 = scalar_lea.vmem %s245_s11, 128 }
  0x37   : > { %v192_v3 = vsel %vm187_vm0, %v191_v2, 0.0  ;;  %p407_p11 = scmp.ne.s32.totalorder %s245_s11, %s406_s26  ;;  %p662_p12 = scmp.ne.s32.totalorder %s656_s24, 0 }
  0x38   : > { %s473_s27 = smov [#allocation5]  }
  0x39   : > { %p408_p13 = pnand %p407_p11, %p662_p12  ;;  %s410_s16 = sshll.u32 %s473_s27, 4  ;;  %s411_s16 = int_to_ptr.vmem [resolvable:$false] %s410_s16 }
  0x3a   : > { %193 = vadd.xlane.f32.xlu0 %v192_v3  ;;  %s412_s28 = scalar_lea.vmem %s411_s16, 256  ;;  %p413_p3 = scmp.lt.s32.totalorder %s245_s11, %s411_s16 }
  0x3b   : > { %p409_p1 = pneg %p408_p13  ;;  %p414_p5 = scmp.lt.s32.totalorder %s412_s28, %s406_s26 }
  0x3d   : > { %p415_p8 = por %p414_p5, %p413_p3 }
  0x3f   : > { %p416_p10 = pnand %p415_p8, %p409_p1 }
  0xbf   : > { %v190_v4 = vpop.xlane.xlu0 %189 }
  0xc0   : > { %v195_v5 = vmul.f32 0.03125, %v190_v4 }
  0xc2   : > { %v196_v6 = vmul.f32 32.0, %v195_v5  ;;  %v213_v18 = vsub.f32 %v186_v0, %v195_v5 }
  0xc3   : > { %v194_v7 = vpop.xlane.xlu0 %193 }
  0xc4   : > { %v197_v8 = vmul.f32 %v196_v6, %v195_v5 }
  0xc6   : > { %v198_v9 = vsub.f32 %v194_v7, %v197_v8 }
  0xc8   : > { %v199_v10 = vmul.f32 0.032258064, %v198_v9 }
  0xca   : > { %v200_v11 = vmax.f32 %v199_v10, 0.0 }
  0xcc   : > { %374 = vrsqrt.f32 %v200_v11  ;;  %vm203_vm1 = vcmp.eq.f32.partialorder %v200_v11, inf  ;;  %v206_v14 = vand.u32 2147483648, %v200_v11  ;;  %vm205_vm2 = vcmp.eq.f32.partialorder %v200_v11, 0.0 }
  0xd9   : > { %v375_v12 = vpop.eup %374 }
  0xda   : > { %v202_v13 = vmul.f32 %v375_v12, %v200_v11 }
  0xdc   : > { %v204_v15 = vsel %vm203_vm1, %v200_v11, %v202_v13 }
  0xdd   : > { %v207_v16 = vsel %vm205_vm2, %v206_v14, %v204_v15 }
  0xde   : > { %v208_v17 = vadd.f32 1e-06, %v207_v16 }
  0xe0   : > { %376 = vrcp.f32 %v208_v17 }
  0xed   : > { %v377_v19 = vpop.eup %376 }
  0xee   : > { %v214_v21 = vmul.f32 %v377_v19, %v213_v18 }
  0xf0   : > { %v221_v23 = vmul.f32 %v322_v20, %v214_v21 }
  0xf2   : > { %v228_v24 = vadd.f32 %v323_v22, %v221_v23 }
  0xf4   : > { %229 = vst.msk [vmem:[%s185_s10] sm:$0xff] %vm187_vm0, %v228_v24 }
  0xf5   : > { %419 = shalt.err (!%p416_p10)
}
  0xf6   : > { %s420_s30 = scalar_lea.hbm %s242_s20, 128  ;;  %s424_s7 = scalar_lea.hbm %s651_s3, 256 }
  0xf7   : > { %p421_p2 = scmp.ne.s32.totalorder %s242_s20, %s420_s30  ;;  %p425_p7 = scmp.lt.s32.totalorder %s242_s20, %s651_s3 }
  0xf8   : > { %p426_p0 = scmp.lt.s32.totalorder %s424_s7, %s420_s30 }
  0xf9   : > { %p422_p4 = pnand %p421_p2, %p662_p12 }
  0xfa   : > { %p427_p6 = por %p426_p0, %p425_p7 }
  0xfb   : > { %p423_p9 = pneg %p422_p4 }
  0xfd   : > { %p428_p11 = pnand %p427_p6, %p423_p9 }
  0xff   : > { %431 = shalt.err (!%p428_p11)
}
 0x100   : > { %330 = dma.vmem_to_hbm [thread:$0]  (%p662_p12), %s245_s11, 128, %s242_s20, %s231_s22  }
 0x101 PF: > { %s256_s6 = sand.u32 1, %s458_s12   ;;  %p663_p13 = scmp.ne.s32.totalorder %s657_s25, 0 }
 0x102   : > { %p664_p1 = scmp.ge.s32.totalorder %s470_s15, 2  ;;  %s257_s8 = scalar_lea.sflag [#allocation4], %s256_s6 }
 0x104   : > { %p337_p3 = pnand %p664_p1, %p663_p13 }
 0x106   : > { %p338_p5 = pneg %p337_p3 }
 0x108   : > { %453 = dma.done.wait (%p338_p5), %s257_s8, 128  }
 0x109   : > { %455 = vsyncadd (%p338_p5), %s257_s8, 4294967168  ;;  %p16_p8 = scmp.ge.s32.totalorder %s519_s18, 4   ;;  %s665_s12 = smov %s462_s13 }
 0x10a   : > { %s666_s13 = smov %s466_s14  ;;  %s667_s14 = smov %s531_s21 }
 0x10b   : > { %s668_s15 = smov %s519_s18  ;;  %18 = sbr.rel (!%p16_p8) target bundleno = 5 (0x5), region = 77 }
 0x110   :  { %262 = vsyncpa [#allocation3], 1 }
 0x111   :  { %264 = vsyncpa [#allocation3 + $0x1], 1 }
 0x112   :  { %265 = vsyncpa [#allocation4], 1 }
 0x113   :  { %267 = vsyncpa [#allocation4 + $0x1], 1 }

</bundles_post_ra>
